<compile_context>
chip_gen: v7x
topology: tpu7x:2x2x1
jax: 0.10.0
libtpu: 0.0.40
codegen_flags: <defaults>
</compile_context>

<pallas_src>
import jax
import jax.numpy as jnp
from jax import lax
from jax.experimental import pallas as pl
from jax.experimental.pallas import tpu as pltpu


def _round_up(x, m):
    return (x + m - 1) // m * m


def _fused_matrix(emb_table, fc_weight, fc_bias):
    """M = E @ W^T + b in f32, without materializing W.T in HBM."""
    m = lax.dot_general(
        emb_table, fc_weight,
        dimension_numbers=(((1,), (1,)), ((), ())),
        precision=lax.Precision.HIGHEST,
        preferred_element_type=jnp.float32,
    )
    return m + fc_bias[None, :]                       # (V, V) f32


def simple_model_kernel(tok_ref, m_ref, out_ref):
    # tok_ref: VMEM (tn, 1)  int32   token ids for this tile
    # m_ref  : VMEM (vk, vo) bf16    fused E @ W^T + b, zero padded to 128
    # out_ref: VMEM (tn, vo) bf16    logits tile for this grid step
    tn = out_ref.shape[0]
    vk = m_ref.shape[0]
    # One vectorized compare builds the lane-dense one-hot (no serial scalar
    # chain).  0/1 is exact in bf16, so the MXU matmul selects bf16 rows of M
    # exactly; f32 accumulation then makes the bf16 output store lossless.
    lanes = lax.broadcasted_iota(jnp.int32, (tn, vk), 1)
    one_hot = (tok_ref[...] == lanes).astype(m_ref.dtype)
    out_ref[...] = jnp.dot(
        one_hot, m_ref[...], preferred_element_type=jnp.float32
    ).astype(out_ref.dtype)


def make_simple_model(emb_table, fc_weight, fc_bias, *, token_tile=256):
    """Returns a jitted forward(x_tokens) -> (logits f32, None).

    The fused/padded weight matrix is computed once here (it depends only on
    the weights) and closed over by the jitted forward, so the per-step path
    contains no weight-side compute.
    """
    vocab, _dim = emb_table.shape
    vk = _round_up(vocab, 128)        # one-hot / contraction lane dim
    vo = _round_up(vocab, 128)        # output lane dim
    fused = _fused_matrix(emb_table, fc_weight, fc_bias)            # (V, V) f32
    fused_p = jnp.pad(fused, ((0, vk - vocab), (0, vo - vocab)))    # zero pad
    fused_p = jax.device_put(fused_p.astype(jnp.bfloat16))          # (vk, vo)

    @jax.jit
    def forward(x_tokens):
        batch, seq = x_tokens.shape
        n = batch * seq
        # NOTE(v7x): at tiny n this is one grid step on one TensorCore; for
        # larger batch*seq the "parallel" axis shards across both TCs.
        tn = min(_round_up(n, 8), token_tile)
        n_pad = _round_up(n, tn)
        tok = jnp.pad(x_tokens.reshape(-1).astype(jnp.int32), (0, n_pad - n))
        tok = tok.reshape(n_pad, 1)   # padded slots hold token 0; sliced off below

        out = pl.pallas_call(
            simple_model_kernel,
            out_shape=jax.ShapeDtypeStruct((n_pad, vo), jnp.bfloat16),
            grid_spec=pltpu.PrefetchScalarGridSpec(
                num_scalar_prefetch=0,
                grid=(n_pad // tn,),
                in_specs=[
                    pl.BlockSpec((tn, 1), lambda i: (i, 0)),     # token tile
                    pl.BlockSpec((vk, vo), lambda i: (0, 0)),    # invariant M
                ],
                out_specs=pl.BlockSpec((tn, vo), lambda i: (i, 0)),
            ),
            compiler_params=pltpu.CompilerParams(
                dimension_semantics=("parallel",)),
        )(tok, fused_p)

        # bf16 output rows are exact copies of bf16 M rows; upcast to f32 and
        # drop padded lanes / padded token rows (padding was zero-filled).
        logits = out[:n, :vocab].astype(jnp.float32).reshape(batch, seq, vocab)
        return logits, None

    return forward


def reference_forward(x_tokens, emb_table, fc_weight, fc_bias):
    emb = emb_table[x_tokens]                        # (B, S, D)
    return emb @ fc_weight.T + fc_bias               # (B, S, V)


if __name__ == "__main__":
    vocab_size = 32
    dim = 8
    batch, seq = 2, 8

    key = jax.random.PRNGKey(0)
    k_emb, k_w, k_b, k_x = jax.random.split(key, 4)

    emb_table = jax.random.normal(k_emb, (vocab_size, dim), dtype=jnp.float32)
    fc_weight = jax.random.normal(k_w, (vocab_size, dim), dtype=jnp.float32) * 0.1
    fc_bias = jax.random.normal(k_b, (vocab_size,), dtype=jnp.float32) * 0.1
    x = jax.random.randint(k_x, (batch, seq), 0, vocab_size, dtype=jnp.int32)

    forward = make_simple_model(emb_table, fc_weight, fc_bias)
    logits, aux = forward(x)
    logits = jax.block_until_ready(logits)

    assert logits.shape == (batch, seq, vocab_size)
    assert aux is None

    # Exact check: each logits row must equal the bf16-quantized fused row
    # (one-hot selects one bf16 row of M; f32 accumulation + bf16 store are
    # exact for that row).
    fused_bf16 = _fused_matrix(emb_table, fc_weight, fc_bias)
    fused_bf16 = fused_bf16.astype(jnp.bfloat16).astype(jnp.float32)
    assert jnp.allclose(logits, fused_bf16[x], atol=1e-6, rtol=0.0)

    # Loose check against full-f32 PyTorch semantics (only the bf16 rounding
    # of the fused weight matrix separates them).
    ref = reference_forward(x, emb_table, fc_weight, fc_bias)
    assert jnp.allclose(logits, ref, atol=3e-2, rtol=3e-2)

    print("KERNEL_OK")
</pallas_src>

<mosaic_0001>
module attributes {stable_mosaic.version = 11 : i64} {
  func.func @simple_model_kernel(%arg0: i32, %arg1: memref<16x1xi32, #tpu.memory_space<vmem>>, %arg2: memref<128x128xbf16, #tpu.memory_space<vmem>>, %arg3: memref<16x128xbf16, #tpu.memory_space<vmem>>) attributes {dimension_semantics = [#tpu.dimension_semantics<parallel>], iteration_bounds = array<i64: 1>, scalar_prefetch = 0 : i64, scratch_operands = 0 : i64, tpu.core_type = #tpu.core_type<tc>, window_params = [{transform_indices = @transform_0, window_bounds = array<i64: 16, 1>}, {pipeline_mode = #tpu.pipeline_mode<synchronous>, transform_indices = @transform_1, window_bounds = array<i64: 128, 128>}, {transform_indices = @transform_2, window_bounds = array<i64: 16, 128>}]} {
    %0 = tpu.iota {dimensions = array<i32: 1>} : vector<16x128xi32>
    %c0 = arith.constant 0 : index
    %c0_0 = arith.constant 0 : index
    %1 = vector.load %arg1[%c0, %c0_0] : memref<16x1xi32, #tpu.memory_space<vmem>>, vector<16x1xi32>
    %2 = vector.broadcast %1 : vector<16x1xi32> to vector<16x128xi32>
    %3 = arith.cmpi eq, %2, %0 : vector<16x128xi32>
    %4 = arith.extui %3 : vector<16x128xi1> to vector<16x128xi32>
    %5 = arith.sitofp %4 : vector<16x128xi32> to vector<16x128xf32>
    %6 = arith.truncf %5 : vector<16x128xf32> to vector<16x128xbf16>
    %c0_1 = arith.constant 0 : index
    %c0_2 = arith.constant 0 : index
    %7 = vector.load %arg2[%c0_1, %c0_2] : memref<128x128xbf16, #tpu.memory_space<vmem>>, vector<128x128xbf16>
    %cst = arith.constant dense<0.000000e+00> : vector<16x128xf32>
    %8 = tpu.matmul %6, %7, %cst {dimension_numbers = #tpu.dot_dimension_numbers<[1], [0], [0], [1], [0, 0, 1, 1], [], []>} : vector<16x128xbf16>, vector<128x128xbf16>, vector<16x128xf32> -> vector<16x128xf32>
    %9 = arith.truncf %8 : vector<16x128xf32> to vector<16x128xbf16>
    %c0_3 = arith.constant 0 : index
    %c0_4 = arith.constant 0 : index
    %10 = vector.load %arg3[%c0_3, %c0_4] : memref<16x128xbf16, #tpu.memory_space<vmem>>, vector<16x128xbf16>
    tpu.vector_store %arg3[%c0_3, %c0_4], %9 {strides = array<i32>} : memref<16x128xbf16, #tpu.memory_space<vmem>>, vector<16x128xbf16>,
    return
  }
  func.func @transform_0(%arg0: i32) -> (i32, i32) {
    %c0_i32 = arith.constant 0 : i32
    %c0_i32_0 = arith.constant 0 : i32
    return %arg0, %c0_i32 : i32, i32
  }
  func.func @transform_1(%arg0: i32) -> (i32, i32) {
    %c0_i32 = arith.constant 0 : i32
    %c0_i32_0 = arith.constant 0 : i32
    %c0_i32_1 = arith.constant 0 : i32
    return %c0_i32, %c0_i32_0 : i32, i32
  }
  func.func @transform_2(%arg0: i32) -> (i32, i32) {
    %c0_i32 = arith.constant 0 : i32
    %c0_i32_0 = arith.constant 0 : i32
    return %arg0, %c0_i32 : i32, i32
  }
}

</mosaic_0001>

<bundles_post_ra>
// kernel: forward.1
= control target key start
LH: loop header
LB: loop body
LE: loop exit
PB: predicated region body
PF: predicated region fallthrough
CT: control target
= control target key end

     0   :  { %7 = vsyncpa [#allocation3], 0  ;;  %s253_s9 = smov [#allocation2]   ;;  %s296_s0 = inlined_call_operand.vmem [shape: s32[16,1], index: 0, kind: input, shape index: {}]   ;;  %s297_s1 = inlined_call_operand.hbm [shape: bf16[128,128], index: 1, kind: input, shape index: {}]   ;;  %s298_s2 = inlined_call_operand.vmem [shape: bf16[16,128], index: 2, kind: output, shape index: {}]  }
   0x1   :  { %s15_s10 = sshll.u32 %s253_s9, 4  ;;  %s229_s13 = scalar_lea.hbm %s297_s1, 1024  ;;  %s16_s10 = int_to_ptr.vmem [resolvable:$true] %s15_s10 }
   0x2   :  { %p230_p0 = scmp.ne.s32.totalorder %s297_s1, %s229_s13  ;;  %p233_p1 = scmp.lt.u32.totalorder %s229_s13, %s297_s1 }
   0x4   :  { %p235_p2 = pnand %p233_p1, %p230_p0 }
   0x6   :  { %238 = shalt.err (!%p235_p2)
}
   0x7   :  { %s239_s18 = scalar_lea.vmem %s16_s10, 1024  ;;  %p244_p4 = scmp.lt.s32.totalorder %s16_s10, %s16_s10 }
   0x8   :  { %p240_p3 = scmp.ne.s32.totalorder %s16_s10, %s239_s18  ;;  %p245_p5 = scmp.lt.s32.totalorder %s239_s18, %s239_s18 }
   0xa   :  { %p246_p6 = por %p245_p5, %p244_p4 }
   0xc   :  { %p247_p7 = pnand %p246_p6, %p240_p3 }
   0xe   :  { %250 = shalt.err (!%p247_p7)
}
   0xf   :  { %s254_s19 = smov 64   ;;  %s255_s20 = smov 4  }
  0x10   :  { %21 = dma.hbm_to_vmem [thread:$0]  %s297_s1, 1024, %s16_s10, [#allocation3], %s254_s19, %s254_s19, %s255_s20  }
  0x11   :  { %251 = dma.done.wait [#allocation3], 1024  }
  0x12   :  { %252 = vsyncadd [#allocation3], 4294966272  ;;  %v256_v0 = vmov 0   ;;  %v257_v1 = vmov 0.0   ;;  %v28_v2 = vld [vmem:[%s296_s0] sm:$0xff]  ;;  %v29_v4 = vld [vmem:[%s296_s0 + $0x8] sm:$0xff]  ;;  %v26_v12 = vlaneseq }
  0x13   :  { %220 = vset.pattern.permute.xlu0 %v256_v0  ;;  %193 = vmatprep.subr.bf16.mxu0 %v257_v1  ;;  %v221_v3 = vld [vmem:[#allocation2] sm:$0xff]   ;;  %v222_v5 = vld [vmem:[#allocation2 + $0x8] sm:$0xff]   ;;  %vm258_vm0 = vmmov 0   ;;  %v223_v6 = vld [vmem:[#allocation2 + $0x10] sm:$0xff]   ;;  %v259_v16 = vmov 1.0|1.0  }
  0x14   :  { %31 = vperm.xlu0 %220, %v28_v2   ;;  %194 = vmatpush3.bf16.msra.mxu0 %v221_v3  ;;  %v224_v7 = vld [vmem:[#allocation2 + $0x18] sm:$0xff]   ;;  %v225_v8 = vld [vmem:[#allocation2 + $0x20] sm:$0xff]   ;;  %v226_v9 = vld [vmem:[#allocation2 + $0x28] sm:$0xff]   ;;  %v27_v14 = vand.u32 127, %v26_v12 }
  0x15   :  { %195 = vmatprep.subr.bf16.mxu0 %v257_v1  ;;  %209 = vmatprep.mubr.msk.bf16.mxu0 %vm258_vm0, %v257_v1  ;;  %v227_v10 = vld [vmem:[#allocation2 + $0x30] sm:$0xff]   ;;  %v228_v11 = vld [vmem:[#allocation2 + $0x38] sm:$0xff]  }
  0x18   :  { %34 = vperm.xlu0 %220, %v29_v4   ;;  %196 = vmatpush3.bf16.msra.mxu0 %v222_v5 }
  0x19   :  { %197 = vmatprep.subr.bf16.mxu0 %v257_v1 }
  0x1c   :  { %198 = vmatpush3.bf16.msra.mxu0 %v223_v6 }
  0x1d   :  { %199 = vmatprep.subr.bf16.mxu0 %v257_v1 }
  0x20   :  { %200 = vmatpush3.bf16.msra.mxu0 %v224_v7 }
  0x21   :  { %201 = vmatprep.subr.bf16.mxu0 %v257_v1 }
  0x24   :  { %202 = vmatpush3.bf16.msra.mxu0 %v225_v8 }
  0x25   :  { %203 = vmatprep.subr.bf16.mxu0 %v257_v1 }
  0x28   :  { %204 = vmatpush3.bf16.msra.mxu0 %v226_v9 }
  0x29   :  { %205 = vmatprep.subr.bf16.mxu0 %v257_v1 }
  0x2c   :  { %206 = vmatpush3.bf16.msra.mxu0 %v227_v10 }
  0x2d   :  { %207 = vmatprep.subr.bf16.mxu0 %v257_v1 }
  0x30   :  { %208 = vmatpush3.bf16.msra.mxu0 %v228_v11 }
  0x93   :  { %v32_v13 = vpop.permute.xlu0 %31 }
  0x94   :  { %vm36_vm1 = vcmp.eq.s32.totalorder %v32_v13, %v27_v14 }
  0x97   :  { %v35_v15 = vpop.permute.xlu0 %34 }
  0x98   :  { %vm37_vm2 = vcmp.eq.s32.totalorder %v35_v15, %v27_v14 }
  0x99   :  { %vm173_vm3 = vmpackc.low %vm37_vm2, %vm36_vm1 }
  0x9a   :  { %210 = vmatmul.mubr.msk.bf16.vlgmr.msra.gmra.mrb[0].mxu0 %vm173_vm3, %v259_v16 }
 0x16d   :  { %v141_v17 = vpop.f32.mrb[0].mxu0 }
 0x16e   :  { %v211_v18 = vpop.f32.mrb[1].mxu0 }
 0x16f   :  { %v144_v19 = vpop.f32.mrb[2].mxu0 }
 0x170   :  { %v182_v20 = vpack.c.bf16 %v144_v19, %v141_v17  ;;  %v212_v21 = vpop.f32.mrb[3].mxu0 }
 0x172   :  { %183 = vst [vmem:[%s298_s2] sm:$0xff] %v182_v20  }
 0x173   :  { %162 = vsyncpa [#allocation3], 1 }

</bundles_post_ra>
